<compile_context>
chip_gen: v5e
topology: v5e:2x2
jax: 0.10.0
libtpu: 0.0.40
codegen_flags: <defaults>
</compile_context>

<pallas_src>
import functools

import jax
import jax.numpy as jnp
from jax.experimental import pallas as pl
from jax.experimental.pallas import tpu as pltpu


def _round_up(v, m):
    return (v + m - 1) // m * m


def _vmem_capacity_bytes():
    """Physical VMEM per TensorCore; safe fallback if the query is unavailable."""
    try:
        info = pltpu.get_tpu_info()
        cap = getattr(info, "vmem_capacity_bytes", None)
        if cap:
            return int(cap)
    except Exception:
        pass
    return 64 * 1024 * 1024  # v7x (smallest) -> always safe


def _moe_kernel(fetch_ref, x_ref, wgu_ref, wd_ref, rw_ref, o_ref, *, n_slots, th):
    """grid = (token_tile, expert_slot, h_chunk); slot 0 = shared expert.

    The output block index is constant over (expert_slot, h_chunk), so the
    (TN, D_pad) f32 output tile stays resident in VMEM and is the accumulator.
    """
    t = pl.program_id(0)
    e = pl.program_id(1)
    hk = pl.program_id(2)

    @pl.when((e == 0) & (hk == 0))
    def _init():
        o_ref[...] = jnp.zeros_like(o_ref)

    # Expert slot e is active for this token tile iff fetch[t*n_slots+e] == e
    # (slot 0 = shared expert, always active).  Inactive slots skip all MXU /
    # VPU work here; their weight DMAs are also elided because the index_maps
    # freeze the block index to the previously fetched block (see moe_forward).
    @pl.when(fetch_ref[t * n_slots + e] == e)
    def _compute():
        x = x_ref[...]                                                      # (TN, Dp) bf16
        # fused gate+up projection: one MXU stream, columns [0:TH]=gate, [TH:2TH]=up
        gu = jnp.dot(x, wgu_ref[...], preferred_element_type=jnp.float32)  # (TN, 2*TH)
        g = gu[:, :th]
        u = gu[:, th:]
        # SiLU(g)*u scaled by the routing weight on the (TN, TH) intermediate
        # (f32, before the bf16 cast); linearity gives (rw*h)@Wd == rw*(h@Wd).
        h = (g * jax.nn.sigmoid(g)) * u * rw_ref[...]                       # rw: (TN, 1)
        o_ref[...] += jnp.dot(h.astype(jnp.bfloat16), wd_ref[...],
                              preferred_element_type=jnp.float32)           # (TN, Dp) f32


def prepare_moe_weights(shared_w, expert_w, *, th_target=None, lane=128):
    """One-time packing (do NOT call per forward):
      * pad D and H up to multiples of 128, H further up to a multiple of TH,
      * fuse gate+up into one (E+1, D_pad, n_h*2*TH) matrix whose H chunk c
        holds [gate chunk c | up chunk c],
      * stack the shared expert in slot 0 ahead of the routed experts,
      * cast to bf16 (bf16 MXU path, half the weight DMA bytes).
    TH is chosen generation-aware (256 on 64-MiB-VMEM parts, else 512) unless
    overridden.  Returns (wgu_all, wd_all, TH); TH is a static Python int.
    """
    wg_s, wu_s, wd_s = shared_w
    wg_e, wu_e, wd_e = expert_w
    E, D, H = wg_e.shape

    D_pad = _round_up(D, lane)
    H_128 = _round_up(H, lane)
    if th_target is None:
        th_target = 256 if _vmem_capacity_bytes() <= 64 * 1024 * 1024 else 512
    TH = min(int(th_target), H_128)
    H_pad = _round_up(H_128, TH)
    n_h = H_pad // TH
    Ep1 = E + 1

    def stack(ws, we, r, c):
        ws = jnp.pad(ws, ((0, r - ws.shape[0]), (0, c - ws.shape[1])))
        we = jnp.pad(we, ((0, 0), (0, r - we.shape[1]), (0, c - we.shape[2])))
        return jnp.concatenate([ws[None], we], axis=0)

    wg_all = stack(wg_s, wg_e, D_pad, H_pad)                       # (E+1, Dp, Hp) f32
    wu_all = stack(wu_s, wu_e, D_pad, H_pad)                       # (E+1, Dp, Hp) f32
    wd_all = stack(wd_s, wd_e, H_pad, D_pad).astype(jnp.bfloat16)  # (E+1, Hp, Dp) bf16

    # interleave per H-chunk: chunk c -> [gate chunk c | up chunk c]
    wgu_all = jnp.concatenate(
        [wg_all.reshape(Ep1, D_pad, n_h, TH),
         wu_all.reshape(Ep1, D_pad, n_h, TH)], axis=-1
    ).reshape(Ep1, D_pad, n_h * 2 * TH).astype(jnp.bfloat16)       # (E+1, Dp, 2*Hp)

    return wgu_all, wd_all, TH


def _select_tn(N, D_pad, TH, vmem_cap, tn_cap):
    """Largest token tile (multiple of 128) that keeps the working set inside
    ~70% of VMEM; on 64-MiB parts (v7x, 2 TCs) keep >= 2 token tiles."""
    fixed = (2 * D_pad * (2 * TH) * 2      # fused gate+up weight tile (bf16, 2 bufs)
             + 2 * TH * D_pad * 2)         # down weight tile (bf16, 2 bufs)
    per_tn = (2 * D_pad * 2                # x tile (bf16, 2 bufs)
              + 2 * D_pad * 4              # resident f32 output tile (2 bufs)
              + 2 * 4                      # routing-weight column
              + (2 * TH + 2 * TH + D_pad) * 4  # f32 temps: gu, silu/prod, y
              + TH * 2)                    # bf16 copy of h
    budget = int(0.70 * vmem_cap)
    tn = max(128, ((budget - fixed) // per_tn) // 128 * 128)
    tn = min(tn, tn_cap)
    if vmem_cap <= 64 * 1024 * 1024 and N >= 256:
        # v7x: two TensorCores -> keep at least two token tiles so both work.
        tn = min(tn, max(128, _round_up((N + 1) // 2, 128)))
    tn = max(16, min(tn, _round_up(N, 16)))
    vmem_est = fixed + tn * per_tn
    return tn, vmem_est


def moe_forward(x, router, wgu_all, wd_all, *, top_k, th, tn_cap=1024):
    """x: (B, T, D) float32 -> (B, T, D) float32.  `th` is the static H-chunk
    size returned by prepare_moe_weights."""
    Ep1, D_pad, H2 = wgu_all.shape
    E = Ep1 - 1
    H_pad = wd_all.shape[1]
    TH = int(th)
    n_h = H_pad // TH
    assert H2 == 2 * H_pad and H_pad % TH == 0

    B, T, D = x.shape
    N = B * T
    x_flat = x.reshape(N, D)

    # --- gating (plain JAX glue) ---
    # TODO(synk): the PyTorch top_k/argsort/bincount token-grouping (grouped
    # matmul) has no clean Pallas TPU equivalent; the dense per-expert routing
    # weight formulation is mathematically identical, and inactive experts are
    # skipped (compute AND weight DMA) inside the kernel.
    logits = x_flat @ router                                     # (N, E)
    probs = jax.nn.softmax(logits, axis=-1)
    topk_scores, topk_idx = jax.lax.top_k(probs, top_k)          # (N, k)
    onehot = jax.nn.one_hot(topk_idx, E, dtype=jnp.float32)      # (N, k, E)
    dense_w = jnp.einsum("nk,nke->ne", topk_scores, onehot)      # (N, E)

    # --- generation-aware tiling ---
    vmem_cap = _vmem_capacity_bytes()
    TN, vmem_est = _select_tn(N, D_pad, TH, vmem_cap, tn_cap)
    N_pad = _round_up(N, TN)
    n_t = N_pad // TN

    x_p = jnp.pad(x_flat.astype(jnp.bfloat16), ((0, N_pad - N), (0, D_pad - D)))

    dw_p = jnp.pad(dense_w, ((0, N_pad - N), (0, 0)))                            # (Np, E)
    shared_col = jnp.pad(jnp.ones((N, 1), jnp.float32), ((0, N_pad - N), (0, 0)))
    rw = jnp.concatenate([shared_col, dw_p], axis=1)                             # (Np, E+1)
    rw = rw.T.reshape(Ep1, N_pad, 1)                                             # (E+1, Np, 1)

    # per-(token-tile, expert-slot) fetch slots -> 1-D SMEM via scalar prefetch.
    # fetch[t, e] == e           : expert e active in tile t (slot 0 always)
    # fetch[t, e] == last active : expert dead -> index_maps freeze the block
    #                              index so the weight DMA is elided.
    routed_any = jnp.any(dw_p.reshape(n_t, TN, E) > 0.0, axis=1)                 # (n_t, E)
    active = jnp.concatenate([jnp.ones((n_t, 1), dtype=jnp.bool_), routed_any], axis=1)
    slots = jnp.arange(Ep1, dtype=jnp.int32)
    fetch = jax.lax.cummax(jnp.where(active, slots[None, :], 0), axis=1)
    fetch = fetch.reshape(-1).astype(jnp.int32)                                  # (n_t*(E+1),)

    # --- index maps (data-dependent via the scalar-prefetched fetch array) ---
    def x_map(t, e, hk, fetch):
        return (t, 0)

    def _fe_fh(t, e, hk, fetch):
        fe = fetch[t * Ep1 + e]
        fh = jnp.where(fe == e, hk, n_h - 1)   # dead expert -> repeat previous block
        return fe, fh

    def wgu_map(t, e, hk, fetch):
        fe, fh = _fe_fh(t, e, hk, fetch)
        return (fe, 0, fh)

    def wd_map(t, e, hk, fetch):
        fe, fh = _fe_fh(t, e, hk, fetch)
        return (fe, fh, 0)

    def rw_map(t, e, hk, fetch):
        return (fetch[t * Ep1 + e], t, 0)

    def o_map(t, e, hk, fetch):
        return (t, 0)

    cost = pl.CostEstimate(
        flops=6 * N_pad * D_pad * H_pad * Ep1,
        transcendentals=N_pad * H_pad * Ep1,
        bytes_accessed=(n_t * Ep1 * 3 * D_pad * H_pad * 2      # bf16 weights (upper bound)
                        + N_pad * D_pad * (2 + 4)              # x in (bf16) + out (f32)
                        + Ep1 * N_pad * 4),                    # routing weights
    )

    vmem_limit = int(min(0.9 * vmem_cap, max(1.3 * vmem_est, 32 * 1024 * 1024)))
    vmem_limit = max(vmem_limit, vmem_est)

    out_p = pl.pallas_call(
        functools.partial(_moe_kernel, n_slots=Ep1, th=TH),
        out_shape=jax.ShapeDtypeStruct((N_pad, D_pad), jnp.float32),
        grid_spec=pltpu.PrefetchScalarGridSpec(
            num_scalar_prefetch=1,
            grid=(n_t, Ep1, n_h),
            in_specs=[
                pl.BlockSpec((TN, D_pad), x_map),
                pl.BlockSpec((pl.Squeezed(), D_pad, 2 * TH), wgu_map),
                pl.BlockSpec((pl.Squeezed(), TH, D_pad), wd_map),
                pl.BlockSpec((pl.Squeezed(), TN, 1), rw_map),
            ],
            out_specs=pl.BlockSpec((TN, D_pad), o_map),
        ),
        compiler_params=pltpu.CompilerParams(
            dimension_semantics=("parallel", "arbitrary", "arbitrary"),
            vmem_limit_bytes=vmem_limit,
        ),
        cost_estimate=cost,
    )(fetch, x_p, wgu_all, wd_all, rw)

    return out_p[:N, :D].reshape(B, T, D)


def moe_reference(x, router, shared_w, expert_w, top_k):
    """Pure-JAX f32 reference mirroring the PyTorch module semantics."""
    B, T, D = x.shape
    N = B * T
    xf = x.reshape(N, D)
    wg_s, wu_s, wd_s = shared_w
    wg_e, wu_e, wd_e = expert_w
    E = wg_e.shape[0]

    shared = (jax.nn.silu(xf @ wg_s) * (xf @ wu_s)) @ wd_s

    probs = jax.nn.softmax(xf @ router, axis=-1)
    scores, idx = jax.lax.top_k(probs, top_k)
    out = jnp.zeros((N, D), x.dtype)
    for e in range(E):
        w = jnp.sum(jnp.where(idx == e, scores, 0.0), axis=-1)          # (N,)
        y = (jax.nn.silu(xf @ wg_e[e]) * (xf @ wu_e[e])) @ wd_e[e]      # (N, D)
        out = out + w[:, None] * y
    return (shared + out).reshape(B, T, D)


if __name__ == "__main__":
    def run_case(key, B, T, D, H, E, top_k, th_target=None, tn_cap=1024):
        keys = jax.random.split(key, 8)
        s = 1.0 / (D ** 0.5)
        sh = 1.0 / (H ** 0.5)
        x = jax.random.normal(keys[0], (B, T, D), jnp.float32)
        router = jax.random.normal(keys[1], (D, E), jnp.float32) * s
        shared_w = (
            jax.random.normal(keys[2], (D, H), jnp.float32) * s,    # shared_gate
            jax.random.normal(keys[3], (D, H), jnp.float32) * s,    # shared_up
            jax.random.normal(keys[4], (H, D), jnp.float32) * sh,   # shared_down
        )
        expert_w = (
            jax.random.normal(keys[5], (E, D, H), jnp.float32) * s,    # gate[i]
            jax.random.normal(keys[6], (E, D, H), jnp.float32) * s,    # up[i]
            jax.random.normal(keys[7], (E, H, D), jnp.float32) * sh,   # down[i]
        )

        # one-time weight packing (pad + fuse gate/up + bf16) — outside the hot path
        wgu_all, wd_all, th = prepare_moe_weights(shared_w, expert_w, th_target=th_target)

        fwd = jax.jit(functools.partial(moe_forward, top_k=top_k, th=th, tn_cap=tn_cap))
        out = fwd(x, router, wgu_all, wd_all)
        jax.block_until_ready(out)

        ref = moe_reference(x, router, shared_w, expert_w, top_k)
        assert out.shape == (B, T, D)
        # bf16 matmul inputs (f32 accumulation) vs f32 reference -> bf16 tolerance.
        assert jnp.allclose(out, ref, rtol=5e-2, atol=5e-2), "mismatch vs reference"

    key = jax.random.PRNGKey(0)
    k1, k2 = jax.random.split(key)

    # Config matching the module: B=2, T=8, d_model=32, d_hidden=64, 4 experts, top_k=2.
    run_case(k1, B=2, T=8, D=32, H=64, E=4, top_k=2)
    # Also exercise n_h > 1 (chunked fused gate+up), multiple token tiles and the
    # inactive-expert compute/DMA skip path.
    run_case(k2, B=2, T=24, D=32, H=384, E=8, top_k=1, th_target=128, tn_cap=16)

    print("KERNEL_OK")
</pallas_src>

<mosaic_0001>
module attributes {stable_mosaic.version = 11 : i64} {
  func.func @_moe_kernel(%arg0: i32, %arg1: i32, %arg2: i32, %arg3: memref<5xi32, #tpu.memory_space<smem>>, %arg4: memref<16x128xbf16, #tpu.memory_space<vmem>>, %arg5: memref<1x128x256xbf16, #tpu.memory_space<vmem>>, %arg6: memref<1x128x128xbf16, #tpu.memory_space<vmem>>, %arg7: memref<1x16x1xf32, #tpu.memory_space<vmem>>, %arg8: memref<16x128xf32, #tpu.memory_space<vmem>>) attributes {dimension_semantics = [#tpu.dimension_semantics<parallel>, #tpu.dimension_semantics<arbitrary>, #tpu.dimension_semantics<arbitrary>], iteration_bounds = array<i64: 1, 5, 1>, scalar_prefetch = 1 : i64, scratch_operands = 0 : i64, tpu.core_type = #tpu.core_type<tc>, window_params = [{transform_indices = @transform_0, window_bounds = array<i64: 16, 128>}, {transform_indices = @transform_1, window_bounds = array<i64: 1, 128, 256>}, {transform_indices = @transform_2, window_bounds = array<i64: 1, 128, 128>}, {transform_indices = @transform_3, window_bounds = array<i64: 1, 16, 1>}, {transform_indices = @transform_4, window_bounds = array<i64: 16, 128>}]} {
    %c0_i32 = arith.constant 0 : i32
    %0 = arith.cmpi eq, %arg1, %c0_i32 : i32
    %c0_i32_0 = arith.constant 0 : i32
    %1 = arith.cmpi eq, %arg2, %c0_i32_0 : i32
    %2 = arith.andi %0, %1 : i1
    %3 = arith.extui %2 : i1 to i32
    %c0_i32_1 = arith.constant 0 : i32
    %4 = arith.cmpi ne, %3, %c0_i32_1 : i32
    scf.if %4 {
      %cst = arith.constant 0.000000e+00 : f32
      %12 = vector.broadcast %cst : f32 to vector<16x128xf32>
      %c0 = arith.constant 0 : index
      %c0_3 = arith.constant 0 : index
      %13 = vector.load %arg8[%c0, %c0_3] : memref<16x128xf32, #tpu.memory_space<vmem>>, vector<16x128xf32>
      tpu.vector_store %arg8[%c0, %c0_3], %12 {strides = array<i32>} : memref<16x128xf32, #tpu.memory_space<vmem>>, vector<16x128xf32>,
    } else {
    }
    %c5_i32 = arith.constant 5 : i32
    %5 = arith.muli %arg0, %c5_i32 : i32
    %6 = arith.addi %5, %arg1 : i32
    %7 = arith.index_cast %6 : i32 to index
    %8 = memref.load %arg3[%7] : memref<5xi32, #tpu.memory_space<smem>>
    %9 = arith.cmpi eq, %8, %arg1 : i32
    %10 = arith.extui %9 : i1 to i32
    %c0_i32_2 = arith.constant 0 : i32
    %11 = arith.cmpi ne, %10, %c0_i32_2 : i32
    scf.if %11 {
      %c0 = arith.constant 0 : index
      %c0_3 = arith.constant 0 : index
      %12 = vector.load %arg4[%c0, %c0_3] : memref<16x128xbf16, #tpu.memory_space<vmem>>, vector<16x128xbf16>
      %c0_4 = arith.constant 0 : index
      %c0_5 = arith.constant 0 : index
      %c0_6 = arith.constant 0 : index
      %13 = vector.load %arg5[%c0_4, %c0_5, %c0_6] : memref<1x128x256xbf16, #tpu.memory_space<vmem>>, vector<1x128x256xbf16>
      %14 = vector.shape_cast %13 : vector<1x128x256xbf16> to vector<128x256xbf16>
      %cst = arith.constant dense<0.000000e+00> : vector<16x256xf32>
      %15 = tpu.matmul %12, %14, %cst {dimension_numbers = #tpu.dot_dimension_numbers<[1], [0], [0], [1], [0, 0, 1, 1], [], []>} : vector<16x128xbf16>, vector<128x256xbf16>, vector<16x256xf32> -> vector<16x256xf32>
      %16 = vector.extract_strided_slice %15 {offsets = [0, 0], sizes = [16, 128], strides = [1, 1]} : vector<16x256xf32> to vector<16x128xf32>
      %17 = vector.extract_strided_slice %15 {offsets = [0, 128], sizes = [16, 128], strides = [1, 1]} : vector<16x256xf32> to vector<16x128xf32>
      %18 = arith.negf %16 : vector<16x128xf32>
      %19 = math.exp %18 : vector<16x128xf32>
      %cst_7 = arith.constant 1.000000e+00 : f32
      %20 = vector.broadcast %cst_7 : f32 to vector<16x128xf32>
      %21 = arith.addf %20, %19 : vector<16x128xf32>
      %22 = arith.divf %20, %21 : vector<16x128xf32>
      %23 = arith.mulf %16, %22 : vector<16x128xf32>
      %24 = arith.mulf %23, %17 : vector<16x128xf32>
      %c0_8 = arith.constant 0 : index
      %c0_9 = arith.constant 0 : index
      %c0_10 = arith.constant 0 : index
      %25 = vector.load %arg7[%c0_8, %c0_9, %c0_10] : memref<1x16x1xf32, #tpu.memory_space<vmem>>, vector<1x16x1xf32>
      %26 = vector.shape_cast %25 : vector<1x16x1xf32> to vector<16x1xf32>
      %27 = vector.broadcast %26 : vector<16x1xf32> to vector<16x128xf32>
      %28 = arith.mulf %24, %27 : vector<16x128xf32>
      %c0_11 = arith.constant 0 : index
      %c0_12 = arith.constant 0 : index
      %29 = vector.load %arg8[%c0_11, %c0_12] : memref<16x128xf32, #tpu.memory_space<vmem>>, vector<16x128xf32>
      %30 = arith.truncf %28 : vector<16x128xf32> to vector<16x128xbf16>
      %c0_13 = arith.constant 0 : index
      %c0_14 = arith.constant 0 : index
      %c0_15 = arith.constant 0 : index
      %31 = vector.load %arg6[%c0_13, %c0_14, %c0_15] : memref<1x128x128xbf16, #tpu.memory_space<vmem>>, vector<1x128x128xbf16>
      %32 = vector.shape_cast %31 : vector<1x128x128xbf16> to vector<128x128xbf16>
      %cst_16 = arith.constant dense<0.000000e+00> : vector<16x128xf32>
      %33 = tpu.matmul %30, %32, %cst_16 {dimension_numbers = #tpu.dot_dimension_numbers<[1], [0], [0], [1], [0, 0, 1, 1], [], []>} : vector<16x128xbf16>, vector<128x128xbf16>, vector<16x128xf32> -> vector<16x128xf32>
      %34 = arith.addf %29, %33 : vector<16x128xf32>
      %c0_17 = arith.constant 0 : index
      %c0_18 = arith.constant 0 : index
      %35 = vector.load %arg8[%c0_17, %c0_18] : memref<16x128xf32, #tpu.memory_space<vmem>>, vector<16x128xf32>
      tpu.vector_store %arg8[%c0_17, %c0_18], %34 {strides = array<i32>} : memref<16x128xf32, #tpu.memory_space<vmem>>, vector<16x128xf32>,
    } else {
    }
    return
  }
  func.func @transform_0(%arg0: i32, %arg1: i32, %arg2: i32, %arg3: memref<5xi32, #tpu.memory_space<smem>>) -> (i32, i32) {
    %c0_i32 = arith.constant 0 : i32
    %c0_i32_0 = arith.constant 0 : i32
    return %arg0, %c0_i32 : i32, i32
  }
  func.func @transform_1(%arg0: i32, %arg1: i32, %arg2: i32, %arg3: memref<5xi32, #tpu.memory_space<smem>>) -> (i32, i32, i32) {
    %c5_i32 = arith.constant 5 : i32
    %0 = arith.muli %arg0, %c5_i32 : i32
    %1 = arith.addi %0, %arg1 : i32
    %2 = arith.index_cast %1 : i32 to index
    %3 = memref.load %arg3[%2] : memref<5xi32, #tpu.memory_space<smem>>
    %4 = arith.cmpi eq, %3, %arg1 : i32
    %c0_i32 = arith.constant 0 : i32
    %5 = arith.select %4, %arg2, %c0_i32 : i32
    %c0_i32_0 = arith.constant 0 : i32
    %c0_i32_1 = arith.constant 0 : i32
    return %3, %c0_i32_0, %5 : i32, i32, i32
  }
  func.func @transform_2(%arg0: i32, %arg1: i32, %arg2: i32, %arg3: memref<5xi32, #tpu.memory_space<smem>>) -> (i32, i32, i32) {
    %c5_i32 = arith.constant 5 : i32
    %0 = arith.muli %arg0, %c5_i32 : i32
    %1 = arith.addi %0, %arg1 : i32
    %2 = arith.index_cast %1 : i32 to index
    %3 = memref.load %arg3[%2] : memref<5xi32, #tpu.memory_space<smem>>
    %4 = arith.cmpi eq, %3, %arg1 : i32
    %c0_i32 = arith.constant 0 : i32
    %5 = arith.select %4, %arg2, %c0_i32 : i32
    %c0_i32_0 = arith.constant 0 : i32
    %c0_i32_1 = arith.constant 0 : i32
    return %3, %5, %c0_i32_0 : i32, i32, i32
  }
  func.func @transform_3(%arg0: i32, %arg1: i32, %arg2: i32, %arg3: memref<5xi32, #tpu.memory_space<smem>>) -> (i32, i32, i32) {
    %c5_i32 = arith.constant 5 : i32
    %0 = arith.muli %arg0, %c5_i32 : i32
    %1 = arith.addi %0, %arg1 : i32
    %2 = arith.index_cast %1 : i32 to index
    %3 = memref.load %arg3[%2] : memref<5xi32, #tpu.memory_space<smem>>
    %c0_i32 = arith.constant 0 : i32
    %c0_i32_0 = arith.constant 0 : i32
    return %3, %arg0, %c0_i32 : i32, i32, i32
  }
  func.func @transform_4(%arg0: i32, %arg1: i32, %arg2: i32, %arg3: memref<5xi32, #tpu.memory_space<smem>>) -> (i32, i32) {
    %c0_i32 = arith.constant 0 : i32
    %c0_i32_0 = arith.constant 0 : i32
    return %arg0, %c0_i32 : i32, i32
  }
}

</mosaic_0001>

<bundles_post_ra>
// kernel: moe_forward.1
= control target key start
LH: loop header
LB: loop body
LE: loop exit
PB: predicated region body
PF: predicated region fallthrough
CT: control target
= control target key end

     0   :  { %s1260_s21 = smov [#allocation3]   ;;  %s1593_s0 = inlined_call_operand.vmem [shape: s32[5], index: 0, kind: input, shape index: {}]   ;;  %s1594_s1 = inlined_call_operand.vmem [shape: bf16[16,128], index: 1, kind: input, shape index: {}]   ;;  %s1595_s2 = inlined_call_operand.hbm [shape: bf16[5,128,256], index: 2, kind: input, shape index: {}]   ;;  %s1596_s3 = inlined_call_operand.hbm [shape: bf16[5,128,128], index: 3, kind: input, shape index: {}]   ;;  %s1597_s4 = inlined_call_operand.vmem [shape: f32[5,16,1], index: 4, kind: input, shape index: {}]   ;;  %s1598_s5 = inlined_call_operand.vmem [shape: f32[16,128], index: 5, kind: output, shape index: {}]  }
   0x1   :  { %1603 = sst [smem:[#allocation19_spill]] %s1595_s2  ;;  %s11_s20 = sshll.u32 %s1593_s0, 4  ;;  %s12_s20 = int_to_ptr.vmem [resolvable:$true] %s11_s20 }
   0x2   :  { %14 = dma.vmem_to_smem %s12_s20, 16, %s1260_s21, [#allocation2] }
   0x3   :  { %1214 = dma.done.wait [#allocation2], 16 }
   0x4   :  { %1215 = vsyncadd [#allocation2], 4294967280 }
   0x5   :  { %17 = sfence }
   0x6   :  { %18 = vsyncpa [#allocation5], 0 }
   0x7   :  { %20 = vsyncpa [#allocation5 + $0x1], 0 }
   0x8   :  { %21 = vsyncpa [#allocation7], 0 }
   0x9   :  { %23 = vsyncpa [#allocation7 + $0x1], 0  ;;  %s1300_s22 = smov 0   ;;  %s1302_s23 = smov 0  }
   0xa   :  { %s1304_s24 = smov 0   ;;  %s1306_s25 = smov 0  }
   0xb   :  { %s1308_s26 = smov 0   ;;  %s1310_s0 = smov 0  }
   0xc   :  { %s1312_s27 = smov 0   ;;  %s1314_s28 = smov 0  }
   0xd   :  { %s1316_s29 = smov 0  }
   0xe LB: > { %1604 = sst [smem:[#allocation15_spill]] %s1246_s0  ;;  %s846_s30 = sadd.s32 4294967295, %s1258_s29   ;;  %s1258_s29 = sphi %s1316_s29, %s29_s29   ;;  %s1254_s28 = sphi %s1314_s28, %s1631_s28   ;;  %s1250_s27 = sphi %s1312_s27, %s1630_s27   ;;  %s1246_s0 = sphi %s1310_s0, %s1623_s0   ;;  %s1242_s26 = sphi %s1308_s26, %s1629_s26   ;;  %s1238_s25 = sphi %s1306_s25, %s1628_s25   ;;  %s1234_s24 = sphi %s1304_s24, %s1627_s24   ;;  %s1230_s23 = sphi %s1302_s23, %s1626_s23   ;;  %s1226_s22 = sphi %s1300_s22, %s1625_s22  }
   0xf   : > { %s44_s6 = sadd.s32 1, %s1254_s28  ;;  %s80_s7 = sld [smem:[#allocation3 + %s1254_s28]] }
  0x10   : > { %p46_p0 = scmp.ge.s32.totalorder %s44_s6, 5  ;;  %s93_s8 = sadd.s32 1, %s1246_s0 }
  0x11   : > { %p100_p1 = scmp.ne.s32.totalorder %s1246_s0, %s1242_s26  ;;  %p101_p2 = scmp.eq.s32.totalorder %s1258_s29, 0 }
  0x12   : > { %s1633_s6 = smov (%p46_p0, %s44_s6), 0  ;;  %p106_p3 = scmp.ne.s32.totalorder %s1242_s26, %s1238_s25 }
  0x13   : > { %1605 = sst [smem:[#allocation16_spill]] %s1633_s6  ;;  %p1354_p4 = scmp.eq.s32.totalorder %s846_s30, 0 }
  0x14   : > { %s85_s9 = sld [smem:[#allocation3 + %s1633_s6]]  ;;  %p1360_p5 = por %p101_p2, %p100_p1 }
  0x15   : > { %s1365_s12 = sld [smem:[#allocation3 + %s1254_s28]]  ;;  %p1369_p6 = por %p1354_p4, %p106_p3 }
  0x16   : > { %p1601_p7 = scmp.lt.s32.totalorder %s1258_s29, 5  ;;  %s237_s14 = sand.u32 1, %s1246_s0  }
  0x17   : > { %s850_s15 = sshll.u32 %s237_s14, 7  ;;  %p856_p10 = scmp.ge.s32.totalorder %s1258_s29, 1 }
  0x18   : > { %p1379_p8 = pnand %p1601_p7, %p1360_p5  ;;  %s241_s18 = scalar_lea.vmem [#allocation4], %s850_s15 }
  0x19   : > { %s1383_s19 = sshll.u32 %s241_s18, 4  ;;  %p312_p11 = scmp.lt.s32.totalorder %s1258_s29, 6 }
  0x1a   : > { %s88_s17 = ssub.s32 %s80_s7, %s85_s9  ;;  %1610 = sst [smem:[#allocation17_spill]] %s1383_s19 }
  0x1b   : > { %p91_p9 = scmp.eq.s32.totalorder %s88_s17, 0  ;;  %p1400_p12 = pnand %p856_p10, %p312_p11 }
  0x1c   : > { %s998_s20 = scalar_select %p1360_p5, [#allocation3], [#allocation8] }
  0x1d   : > { %s1389_s21 = scalar_select %p91_p9, %s1246_s0, %s93_s8  }
  0x1e   : > { %s999_s25 = scalar_select %p1360_p5, %s1254_s28, 0 }
  0x1f   : > { %1611 = sst [smem:[#allocation18_spill]] %s1389_s21  ;;  %s1635_s20 = smov (!%p1601_p7, %s998_s20), [#allocation10] }
  0x20   : > { %s1637_s25 = smov (!%p1601_p7, %s999_s25), 0  ;;  %s1405_s9 = sld [smem:[#allocation3 + %s1633_s6]] }
  0x21   : > { %s244_s30 = sld [smem:[%s1635_s20 + %s1637_s25]]  ;;  %s131_s8 = sadd.s32 1, %s1234_s24 }
  0x22   : > { %s1613_s2 = sld [smem:[#allocation19_spill]]  ;;  %p138_p13 = scmp.ne.s32.totalorder %s1234_s24, %s1230_s23 }
  0x23   : > { %p144_p0 = scmp.ne.s32.totalorder %s1230_s23, %s1226_s22  ;;  %s238_s25 = scalar_lea.sflag [#allocation5], %s237_s14 }
  0x24   : > { %p1417_p1 = por %p138_p13, %p101_p2  ;;  %p1122_p5 = pneg %p1379_p8 }
  0x27   : > { %s969_s15 = sshll.u32 %s244_s30, 7 }
  0x28   : > { %s253_s18 = scalar_lea.hbm %s1613_s2, %s969_s15  ;;  %s1125_s17 = scalar_lea.hbm %s1613_s2, 640 }
  0x29   : > { %s254_s19 = sshll.u32 %s253_s18, 4  ;;  %s255_s19 = int_to_ptr.hbm [resolvable:$true] %s254_s19 }
  0x2a   : > { %s1118_s21 = sshra.s32 %s255_s19, 4  ;;  %s1119_s21 = int_to_ptr.hbm [resolvable:$true] %s1118_s21 }
  0x2b   : > { %s1120_s6 = scalar_lea.hbm %s1119_s21, 128  ;;  %p1126_p2 = scmp.lt.s32.totalorder %s1119_s21, %s1613_s2 }
  0x2c   : > { %p1121_p3 = scmp.ne.s32.totalorder %s1119_s21, %s1120_s6  ;;  %p1127_p11 = scmp.lt.s32.totalorder %s1125_s17, %s1120_s6 }
  0x2e   : > { %p1123_p9 = pnand %p1122_p5, %p1121_p3  ;;  %p1128_p13 = por %p1127_p11, %p1126_p2 }
  0x30   : > { %p1124_p10 = pneg %p1123_p9 }
  0x32   : > { %p1129_p7 = pnand %p1128_p13, %p1124_p10 }
  0x34   : > { %1132 = shalt.err (!%p1129_p7)
}
  0x35   : > { %s1261_s14 = smov 128   ;;  %s1615_s0 = sld [smem:[#allocation17_spill]] }
  0x36   : > { %s1262_s6 = smov 8   ;;  %s126_s30 = ssub.s32 %s1365_s12, %s1405_s9 }
  0x37   : > { %p1440_p7 = por %p144_p0, %p1354_p4  ;;  %p129_p3 = scmp.eq.s32.totalorder %s126_s30, 0 }
  0x38   : > { %s266_s17 = sand.u32 1, %s1234_s24   ;;  %p1618_p5 = scmp.lt.s32.totalorder %s1258_s29, 5 }
  0x39   : > { %s1446_s11 = scalar_select %p129_p3, %s1234_s24, %s131_s8  }
  0x3a   : > { %s853_s18 = sshll.u32 %s266_s17, 6  ;;  %p1452_p9 = pnand %p1618_p5, %p1417_p1 }
  0x3b   : > { %s1616_s21 = int_to_ptr.vmem [resolvable:$true] %s1615_s0  ;;  %p1621_p4 = pmov %p1618_p5 }
  0x3c   : > { %1011 = dma.hbm_to_vmem [thread:$0]  (!%p1379_p8), %s255_s19, 2048, %s1616_s21, %s238_s25, %s1261_s14, %s1261_s14, %s1262_s6  }
  0x3d   : > { %s1001_s0 = scalar_select %p1417_p1, [#allocation3], [#allocation9] }
  0x3e   : > { %s1002_s10 = scalar_select %p1417_p1, %s1254_s28, 0 }
  0x3f   : > { %p1620_p8 = pmov %p1618_p5  ;;  %s270_s12 = scalar_lea.vmem [#allocation6], %s853_s18 }
  0x40   : > { %s1641_s10 = smov (!%p1621_p4, %s1002_s10), 0  ;;  %s285_s16 = sshll.u32 %s270_s12, 4  ;;  %s286_s16 = int_to_ptr.vmem [resolvable:$true] %s285_s16 }
  0x41   : > { %s1639_s0 = smov (!%p1620_p8, %s1001_s0), [#allocation11]  ;;  %s267_s6 = scalar_lea.sflag [#allocation7], %s266_s17 }
  0x42   : > { %s273_s22 = sld [smem:[%s1639_s0 + %s1641_s10]]  ;;  %p1152_p1 = pneg %p1452_p9 }
  0x43   : > { %s1155_s0 = scalar_lea.hbm %s1596_s3, 320 }
  0x48   : > { %s970_s19 = sshll.u32 %s273_s22, 6 }
  0x49   : > { %s282_s25 = scalar_lea.hbm %s1596_s3, %s970_s19 }
  0x4a   : > { %s283_s14 = sshll.u32 %s282_s25, 4  ;;  %s284_s14 = int_to_ptr.hbm [resolvable:$true] %s283_s14 }
  0x4b   : > { %s1148_s21 = sshra.s32 %s284_s14, 4  ;;  %s1149_s21 = int_to_ptr.hbm [resolvable:$true] %s1148_s21 }
  0x4c   : > { %s1150_s20 = scalar_lea.hbm %s1149_s21, 64  ;;  %p1156_p11 = scmp.lt.s32.totalorder %s1149_s21, %s1596_s3 }
  0x4d   : > { %p1151_p0 = scmp.ne.s32.totalorder %s1149_s21, %s1150_s20  ;;  %p1157_p13 = scmp.lt.s32.totalorder %s1155_s0, %s1150_s20 }
  0x4f   : > { %p1153_p10 = pnand %p1152_p1, %p1151_p0  ;;  %p1158_p3 = por %p1157_p13, %p1156_p11 }
  0x51   : > { %p1154_p2 = pneg %p1153_p10 }
  0x53   : > { %p1159_p5 = pnand %p1158_p3, %p1154_p2 }
  0x55   : > { %1162 = shalt.err (!%p1159_p5)
}
  0x56   : > { %s1263_s17 = smov 64   ;;  %s1264_s12 = smov 4  }
  0x57   : > { %1016 = dma.hbm_to_vmem [thread:$0]  (!%p1452_p9), %s284_s14, 1024, %s286_s16, %s267_s6, %s1263_s17, %s1263_s17, %s1264_s12  }
  0x58   : > { %316 = sbr.rel (%p1400_p12) target bundleno = 469 (0x1d5), region = 36  ;;  %s318_s19 = sand.u32 (!%p1400_p12), 1, %s1242_s26  }
  0x59   : > { %s857_s9 = sshll.u32 (!%p1400_p12), %s318_s19, 7  ;;  %s319_s8 = scalar_lea.sflag (!%p1400_p12), [#allocation5], %s318_s19 }
  0x5a   : > { %s1481_s25 = scalar_lea.vmem (!%p1400_p12), [#allocation4], %s857_s9 }
  0x5d   : > { %1217 = dma.done.wait (%p1369_p6), %s319_s8, 2048  }
  0x5e   : > { %1219 = vsyncadd (%p1369_p6), %s319_s8, 4294965248  ;;  %s328_s21 = sand.u32 1, %s1230_s23  }
  0x5f   : > { %s858_s2 = sshll.u32 %s328_s21, 6  ;;  %s329_s16 = scalar_lea.sflag [#allocation7], %s328_s21 }
  0x60   : > { %s1488_s14 = scalar_lea.vmem [#allocation6], %s858_s2 }
  0x61   : > { %1221 = dma.done.wait (%p1440_p7), %s329_s16, 1024  }
  0x62   : > { %1223 = vsyncadd (%p1440_p7), %s329_s16, 4294966272  ;;  %p420_p12 = scmp.eq.s32.totalorder %s1250_s27, 0  ;;  %s400_s7 = sld [smem:[#allocation3 + %s1250_s27]] }
  0x63   : > { %v1265_v0 = vmov (%p420_p12), 0.0  }
  0x64   : > { %426 = vst [vmem:[%s1598_s5] sm:$0xff] (%p420_p12), %v1265_v0 }
  0x65   : > { %427 = vst [vmem:[%s1598_s5 + $0x8] sm:$0xff] (%p420_p12), %v1265_v0 }
  0x68   : > { %p402_p9 = scmp.lt.s32.totalorder %s400_s7, 4  ;;  %425 = sbr.rel (!%p420_p12) target bundleno = 109 (0x6d), region = 48 }
  0x6a   : > { %s1643_s7 = smov (!%p402_p9, %s400_s7), 4 }
  0x6b   : > { %s971_s13 = sshll.u32 %s1643_s7, 4 }
  0x6c   : > { %s1499_s30 = scalar_lea.vmem %s1597_s4, %s971_s13 }
  0x6d PF: > { %s430_s22 = sld [smem:[#allocation3 + %s1250_s27]] }
  0x73   : > { %p862_p6 = scmp.ne.s32.totalorder %s430_s22, %s1250_s27 }
  0x75   : > { %434 = sbr.rel (%p862_p6) target bundleno = 469 (0x1d5), region = 52 }
  0x7a   : > { %v925_v1 = vld [vmem:[%s1481_s25 + $0x70] sm:$0xf]  ;;  %v989_v2 = vld [vmem:[%s1481_s25 + $0x74] sm:$0xf0]  ;;  %v917_v3 = vld [vmem:[%s1481_s25 + $0x60] sm:$0xf] }
  0x7b   : > { %v926_v4 = vor.u32 %v989_v2, %v925_v1  ;;  %v987_v5 = vld [vmem:[%s1481_s25 + $0x64] sm:$0xf0]  ;;  %v909_v7 = vld [vmem:[%s1481_s25 + $0x50] sm:$0xf]  ;;  %v985_v8 = vld [vmem:[%s1481_s25 + $0x54] sm:$0xf0] }
  0x7c   : > { %v918_v6 = vor.u32 %v987_v5, %v917_v3  ;;  %v988_v9 = vld [vmem:[%s1481_s25 + $0x74] sm:$0xf]  ;;  %v927_v10 = vld [vmem:[%s1481_s25 + $0x78] sm:$0xf0]  ;;  %v986_v12 = vld [vmem:[%s1481_s25 + $0x64] sm:$0xf]  ;;  %v910_v14 = vor.u32 %v985_v8, %v909_v7 }
  0x7d   : > { %539 = vmatpush.bf16.msra.mxu0 %v926_v4  ;;  %v930_v11 = vor.u32 %v988_v9, %v927_v10  ;;  %v919_v13 = vld [vmem:[%s1481_s25 + $0x68] sm:$0xf0]  ;;  %v901_v15 = vld [vmem:[%s1481_s25 + $0x40] sm:$0xf]  ;;  %v983_v17 = vld [vmem:[%s1481_s25 + $0x44] sm:$0xf0] }
  0x7e   : > { %v922_v16 = vor.u32 %v986_v12, %v919_v13  ;;  %v984_v18 = vld [vmem:[%s1481_s25 + $0x54] sm:$0xf]  ;;  %v911_v19 = vld [vmem:[%s1481_s25 + $0x58] sm:$0xf0]  ;;  %v1266_v20 = vmov 0   ;;  %v902_v21 = vor.u32 %v983_v17, %v901_v15  ;;  %v609_v24 = vld [vmem:[%s1499_s30] sm:$0xff] }
  0x7f   : > { %553 = vmatpush.bf16.msra.mxu1 %v930_v11  ;;  %1097 = vset.pattern.permute.xlu0 %v1266_v20  ;;  %v893_v22 = vld [vmem:[%s1481_s25 + $0x30] sm:$0xf]  ;;  %v914_v23 = vor.u32 %v984_v18, %v911_v19  ;;  %v981_v25 = vld [vmem:[%s1481_s25 + $0x34] sm:$0xf0]  ;;  %v982_v26 = vld [vmem:[%s1481_s25 + $0x44] sm:$0xf] }
  0x80   : > { %v903_v27 = vld [vmem:[%s1481_s25 + $0x48] sm:$0xf0]  ;;  %613 = vperm.xlu0 %1097, %v609_v24   ;;  %v894_v28 = vor.u32 %v981_v25, %v893_v22  ;;  %v885_v29 = vld [vmem:[%s1481_s25 + $0x20] sm:$0xf]  ;;  %v979_v31 = vld [vmem:[%s1481_s25 + $0x24] sm:$0xf0] }
  0x81   : > { %540 = vmatpush.bf16.msra.mxu0 %v918_v6  ;;  %v906_v30 = vor.u32 %v982_v26, %v903_v27  ;;  %v980_v32 = vld [vmem:[%s1481_s25 + $0x34] sm:$0xf]  ;;  %v895_v33 = vld [vmem:[%s1481_s25 + $0x38] sm:$0xf0]  ;;  %v610_v34 = vld [vmem:[%s1499_s30 + $0x8] sm:$0xff]  ;;  %v886_v35 = vor.u32 %v979_v31, %v885_v29 }
  0x82   : > { %v877_v36 = vld [vmem:[%s1481_s25 + $0x10] sm:$0xf]  ;;  %v898_v37 = vor.u32 %v980_v32, %v895_v33  ;;  %v977_v38 = vld [vmem:[%s1481_s25 + $0x14] sm:$0xf0]  ;;  %v978_v39 = vld [vmem:[%s1481_s25 + $0x24] sm:$0xf] }
  0x83   : > { %554 = vmatpush.bf16.msra.mxu1 %v922_v16  ;;  %v887_v40 = vld [vmem:[%s1481_s25 + $0x28] sm:$0xf0]  ;;  %v878_v41 = vor.u32 %v977_v38, %v877_v36  ;;  %v869_v42 = vld [vmem:[%s1481_s25] sm:$0xf]  ;;  %v975_v44 = vld [vmem:[%s1481_s25 + $0x4] sm:$0xf0] }
  0x84   : > { %v890_v43 = vor.u32 %v978_v39, %v887_v40  ;;  %v976_v45 = vld [vmem:[%s1481_s25 + $0x14] sm:$0xf]  ;;  %v879_v46 = vld [vmem:[%s1481_s25 + $0x18] sm:$0xf0]  ;;  %v870_v47 = vor.u32 %v975_v44, %v869_v42  ;;  %v974_v49 = vld [vmem:[%s1481_s25 + $0x4] sm:$0xf] }
  0x85   : > { %541 = vmatpush.bf16.msra.mxu0 %v910_v14  ;;  %v882_v48 = vor.u32 %v976_v45, %v879_v46  ;;  %v871_v50 = vld [vmem:[%s1481_s25 + $0x8] sm:$0xf0]  ;;  %v973_v51 = vld [vmem:[%s1594_s1] sm:$0xff]  ;;  %v997_v53 = vld [vmem:[%s1488_s14 + $0x38] sm:$0xff] }
  0x86   : > { %v874_v52 = vor.u32 %v974_v49, %v871_v50  ;;  %690 = vmatpush.bf16.msra.mxu2 %v997_v53  ;;  %v996_v54 = vld [vmem:[%s1488_s14 + $0x30] sm:$0xff]  ;;  %v995_v55 = vld [vmem:[%s1488_s14 + $0x28] sm:$0xff]  ;;  %v994_v56 = vld [vmem:[%s1488_s14 + $0x20] sm:$0xff] }
  0x87   : > { %555 = vmatpush.bf16.msra.mxu1 %v914_v23  ;;  %v993_v57 = vld [vmem:[%s1488_s14 + $0x18] sm:$0xff]  ;;  %v992_v59 = vld [vmem:[%s1488_s14 + $0x10] sm:$0xff]  ;;  %v991_v61 = vld [vmem:[%s1488_s14 + $0x8] sm:$0xff] }
  0x88   : > { %618 = vperm.xlu0 %1097, %v610_v34   ;;  %v990_v63 = vld [vmem:[%s1488_s14] sm:$0xff]  ;;  %v624_v39 = vld [vmem:[%s1598_s5 + $0x8] sm:$0xff] }
  0x89   : > { %542 = vmatpush.bf16.msra.mxu0 %v902_v21  ;;  %v623_v36 = vld [vmem:[%s1598_s5] sm:$0xff] }
  0x8a   : > { %691 = vmatpush.bf16.msra.mxu2 %v996_v54 }
  0x8b   : > { %556 = vmatpush.bf16.msra.mxu1 %v906_v30 }
  0x8d   : > { %543 = vmatpush.bf16.msra.mxu0 %v894_v28 }
  0x8e   : > { %692 = vmatpush.bf16.msra.mxu2 %v995_v55 }
  0x8f   : > { %557 = vmatpush.bf16.msra.mxu1 %v898_v37 }
  0x91   : > { %544 = vmatpush.bf16.msra.mxu0 %v886_v35 }
  0x92   : > { %693 = vmatpush.bf16.msra.mxu2 %v994_v56 }
  0x93   : > { %558 = vmatpush.bf16.msra.mxu1 %v890_v43 }
  0x95   : > { %545 = vmatpush.bf16.msra.mxu0 %v878_v41 }
  0x96   : > { %694 = vmatpush.bf16.msra.mxu2 %v993_v57 }
  0x97   : > { %559 = vmatpush.bf16.msra.mxu1 %v882_v48 }
  0x99   : > { %546 = vmatpush.bf16.msra.mxu0 %v870_v47 }
  0x9a   : > { %695 = vmatpush.bf16.msra.mxu2 %v992_v59 }
  0x9b   : > { %560 = vmatpush.bf16.msra.mxu1 %v874_v52 }
  0x9c   : > { %547 = vmatmul.bf16.vlgmr.msra.gmra.mxu0 %v973_v51 }
  0x9e   : > { %561 = vmatmul.bf16.vlgmr.msra.gmra.mxu1 %v973_v51  ;;  %696 = vmatpush.bf16.msra.mxu2 %v991_v61 }
  0xa2   : > { %697 = vmatpush.bf16.msra.mxu2 %v990_v63 }
  0xf2   : > { %v614_v20 = vpop.permute.xlu0 %613 }
  0xfa   : > { %v619_v32 = vpop.permute.xlu0 %618 }
 0x119   : > { %v548_v58 = vpop.f32.mrf.mxu0 }
 0x11a   : > { %v931_v60 = vmul.f32 -1.442695, %v548_v58 }
 0x11b   : > { %v562_v16 = vpop.f32.mrf.mxu1 }
 0x11c   : > { %1098 = vpow2.f32 %v931_v60 }
 0x121   : > { %v550_v62 = vpop.f32.mrf.mxu0 }
 0x122   : > { %v1099_v0 = vpop.eup %1098  ;;  %v932_v1 = vmul.f32 -1.442695, %v550_v62 }
 0x123   : > { %v573_v2 = vadd.f32 1.0, %v1099_v0  ;;  %v564_v30 = vpop.f32.mrf.mxu1 }
 0x124   : > { %1100 = vpow2.f32 %v932_v1 }
 0x125   : > { %1102 = vrcp.f32 %v573_v2  ;;  %v586_v9 = vand.u32 2147483648, %v573_v2  ;;  %vm580_vm1 = vweird.f32 %v573_v2  ;;  %v584_v11 = vand.u32 2147483647, %v573_v2 }
 0x127   : > { %v587_v15 = vor.u32 1.1754944e-38, %v586_v9  ;;  %vm585_vm3 = vcmp.eq.f32.partialorder %v584_v11, 8.507059e+37 }
 0x12a   : > { %v1101_v3 = vpop.eup %1100 }
 0x12b   : > { %v1103_v4 = vpop.eup %1102  ;;  %v574_v5 = vadd.f32 1.0, %v1101_v3 }
 0x12c   : > { %v576_v6 = vmul.f32 %v1103_v4, %v573_v2  ;;  %vm581_vm0 = vweird.f32 %v1103_v4 }
 0x12d   : > { %1104 = vrcp.f32 %v574_v5  ;;  %vm582_vm2 = vmor %vm580_vm1, %vm581_vm0  ;;  %v601_v19 = vand.u32 2147483648, %v574_v5  ;;  %v599_v22 = vand.u32 2147483647, %v574_v5  ;;  %vm595_vm5 = vweird.f32 %v574_v5 }
 0x12e   : > { %v577_v7 = vsub.f32 1.0, %v576_v6 }
 0x12f   : > { %v602_v25 = vor.u32 1.1754944e-38, %v601_v19  ;;  %vm600_vm7 = vcmp.eq.f32.partialorder %v599_v22, 8.507059e+37 }
 0x130   : > { %v578_v8 = vmul.f32 %v1103_v4, %v577_v7 }
 0x132   : > { %v579_v10 = vadd.f32 %v1103_v4, %v578_v8 }
 0x133   : > { %v1105_v12 = vpop.eup %1104 }
 0x134   : > { %v583_v13 = vsel %vm582_vm2, %v1103_v4, %v579_v10  ;;  %v591_v14 = vmul.f32 %v1105_v12, %v574_v5  ;;  %vm596_vm4 = vweird.f32 %v1105_v12 }
 0x135   : > { %v588_v18 = vsel %vm585_vm3, %v587_v15, %v583_v13  ;;  %vm597_vm6 = vmor %vm595_vm5, %vm596_vm4 }
 0x136   : > { %v592_v17 = vsub.f32 1.0, %v591_v14  ;;  %v605_v23 = vmul.f32 %v588_v18, %v548_v58 }
 0x138   : > { %v593_v21 = vmul.f32 %v1105_v12, %v592_v17  ;;  %v607_v29 = vmul.f32 %v605_v23, %v562_v16 }
 0x13a   : > { %v594_v24 = vadd.f32 %v1105_v12, %v593_v21  ;;  %v621_v33 = vmul.f32 %v614_v20, %v607_v29 }
 0x13c   : > { %v598_v26 = vsel %vm597_vm6, %v1105_v12, %v594_v24 }
 0x13d   : > { %v603_v27 = vsel %vm600_vm7, %v602_v25, %v598_v26 }
 0x13e   : > { %v606_v28 = vmul.f32 %v603_v27, %v550_v62 }
 0x140   : > { %v608_v31 = vmul.f32 %v606_v28, %v564_v30 }
 0x142   : > { %v622_v34 = vmul.f32 %v619_v32, %v608_v31 }
 0x144   : > { %v625_v35 = vpack.c.bf16 %v622_v34, %v621_v33 }
 0x146   : > { %698 = vmatmul.bf16.vlgmr.msra.gmra.mxu2 %v625_v35 }
 0x1c9   : > { %v699_v37 = vpop.f32.mrf.mxu2 }
 0x1ca   : > { %v704_v38 = vadd.f32 %v699_v37, %v623_v36 }
 0x1cc   : > { %706 = vst [vmem:[%s1598_s5] sm:$0xff] %v704_v38 }
 0x1d1   : > { %v701_v40 = vpop.f32.mrf.mxu2 }
 0x1d2   : > { %v705_v41 = vadd.f32 %v701_v40, %v624_v39 }
 0x1d4   : > { %707 = vst [vmem:[%s1598_s5 + $0x8] sm:$0xff] %v705_v41 }
 0x1d5 PF: > { %s29_s29 = sadd.s32 1, %s1258_s29   ;;  %s1622_s14 = sld [smem:[#allocation15_spill]] }
 0x1d6   : > { %p26_p7 = scmp.ge.s32.totalorder %s29_s29, 7   ;;  %s1623_s0 = sld [smem:[#allocation18_spill]] }
 0x1d7   : > { %s1624_s7 = sld [smem:[#allocation16_spill]]  ;;  %s1625_s22 = smov %s1230_s23 }
 0x1d8   : > { %s1626_s23 = smov %s1234_s24  ;;  %s1627_s24 = smov %s1446_s11 }
 0x1d9   : > { %s1628_s25 = smov %s1242_s26  ;;  %s1630_s27 = smov %s1254_s28 }
 0x1da   :  { %28 = sbr.rel (!%p26_p7) target bundleno = 14 (0xe), region = 103 }
 0x1db   : > { %s1629_s26 = smov %s1622_s14 }
 0x1dd   : > { %s1631_s28 = smov %s1624_s7 }
 0x1df   :  { %730 = vsyncpa [#allocation5], 1 }
 0x1e0   :  { %732 = vsyncpa [#allocation5 + $0x1], 1 }
 0x1e1   :  { %733 = vsyncpa [#allocation7], 1 }
 0x1e2   :  { %735 = vsyncpa [#allocation7 + $0x1], 1 }

</bundles_post_ra>
